<compile_context>
chip_gen: v7x
topology: tpu7x:2x2x1
jax: 0.10.0
libtpu: 0.0.40
codegen_flags: <defaults>
</compile_context>

<pallas_src>
import jax
import jax.numpy as jnp
from jax import lax
from jax.experimental import pallas as pl
from jax.experimental.pallas import tpu as pltpu

EPS = 1e-5


# ----------------------------------------------------------------------------
# Fused DenseBlock kernel: all layers for one image, slab resident in VMEM.
# ----------------------------------------------------------------------------
def _make_dense_block_kernel(h, w, cin0, growth, cmid, num_layers):
    p = h * w

    def kernel(x_ref, mask_ref, *rest):
        """x_ref    : (Cin0, P)        input channels of one image
        mask_ref : (9, P)            f32 validity mask per 3x3 tap
        rest     : per layer (s1, b1, w1p, b2, w2s) refs, then out_ref
        out_ref  : (Cin0 + L*G, P)   the channel slab (input + new features)
        """
        out_ref = rest[-1]
        param_refs = rest[:-1]

        # Seed the slab (the resident output block) with the input channels.
        out_ref[:cin0, :] = x_ref[...]

        cin_l = cin0
        for layer in range(num_layers):
            s1, b1, w1p, b2, w2 = param_refs[5 * layer:5 * layer + 5]

            # BN1 (eval mode, folded to scale/shift) + ReLU on the prefix.
            a1 = jnp.maximum(out_ref[:cin_l, :] * s1[...] + b1[...], 0.0)

            # 1x1 conv; BN2's scale is pre-folded into w1p's rows, so only
            # the shift remains before the ReLU.
            mid = jnp.dot(w1p[...], a1, preferred_element_type=jnp.float32)
            a2 = jnp.maximum(mid + b2[...], 0.0)            # (Cmid, P)

            # 3x3 conv, padding=1: nine accumulating matmuls against
            # roll-shifted, boundary-masked views of a2 (no im2col buffer).
            acc = jnp.dot(w2[4], a2,                         # center tap
                          preferred_element_type=jnp.float32)
            for ky in range(3):
                for kx in range(3):
                    dy, dx = ky - 1, kx - 1
                    if dy == 0 and dx == 0:
                        continue
                    t = 3 * ky + kx
                    # tap[c, p] = a2[c, p + dy*W + dx], zero where the tap
                    # falls outside the image (the mask also kills the
                    # circular wrap introduced by the roll).
                    shift = (-(dy * w + dx)) % p
                    tap = (pltpu.roll(a2, shift, axis=1)
                           * mask_ref[t:t + 1, :])
                    acc = acc + jnp.dot(w2[t], tap,
                                        preferred_element_type=jnp.float32)

            # Write the G new channels straight into the resident slab.
            out_ref[cin_l:cin_l + growth, :] = acc.astype(out_ref.dtype)
            cin_l += growth

    return kernel


def _tap_masks(h, w):
    """(9, H*W) float32 validity masks for the 3x3 taps (padding=1)."""
    y, x = jnp.meshgrid(jnp.arange(h), jnp.arange(w), indexing="ij")
    rows = []
    for ky in range(3):
        for kx in range(3):
            dy, dx = ky - 1, kx - 1
            valid = ((y + dy >= 0) & (y + dy < h) &
                     (x + dx >= 0) & (x + dx < w))
            rows.append(valid.reshape(-1))
    return jnp.stack(rows).astype(jnp.float32)


# ----------------------------------------------------------------------------
# Wrapper: one pallas_call for the whole block, grid over the batch.
# ----------------------------------------------------------------------------
def dense_block_forward(x_nchw, prepped):
    """DenseBlock forward. Input NCHW, output (N, Cin + L*G, H, W)."""
    n, cin0, h, w = x_nchw.shape
    p = h * w
    num_layers = len(prepped)
    cmid = prepped[0][2].shape[0]
    growth = prepped[0][4].shape[1]
    c_tot = cin0 + num_layers * growth

    x_flat = x_nchw.reshape(n, cin0, p)          # free: contiguous NCHW
    masks = _tap_masks(h, w)                     # trace-time constant

    flat_params = []
    in_specs = [
        pl.BlockSpec((None, cin0, p), lambda b: (b, 0, 0)),   # per-image x
        pl.BlockSpec((9, p), lambda b: (0, 0)),               # tap masks
    ]
    for layer_params in prepped:                 # resident weights/BN params
        for arr in layer_params:
            zeros = (0,) * arr.ndim
            in_specs.append(pl.BlockSpec(arr.shape, lambda b, _z=zeros: _z))
            flat_params.append(arr)

    flops = 0
    for l in range(num_layers):
        cin_l = cin0 + l * growth
        flops += 2 * n * p * (cin_l * cmid + 9 * cmid * growth)
    bytes_accessed = 4 * (n * p * (cin0 + c_tot) + 9 * p
                          + sum(int(a.size) for a in flat_params))

    kernel = _make_dense_block_kernel(h, w, cin0, growth, cmid, num_layers)

    out = pl.pallas_call(
        kernel,
        out_shape=jax.ShapeDtypeStruct((n, c_tot, p), x_nchw.dtype),
        grid=(n,),
        in_specs=in_specs,
        out_specs=pl.BlockSpec((None, c_tot, p), lambda b: (b, 0, 0)),
        compiler_params=pltpu.CompilerParams(
            dimension_semantics=("parallel",)),
        cost_estimate=pl.CostEstimate(flops=flops, transcendentals=0,
                                      bytes_accessed=bytes_accessed),
    )(x_flat, masks, *flat_params)

    return out.reshape(n, c_tot, h, w)


# ----------------------------------------------------------------------------
# Parameter prep (hoisted out of the jitted forward): fold BN, re-orient W.
# ----------------------------------------------------------------------------
def prepare_block_params(block_params):
    """Per layer returns:
      s1, b1 : (Cin_l, 1)    folded BN1 scale / shift (eval mode)
      w1p    : (Cmid, Cin_l) 1x1 conv weight with BN2 scale folded into rows
      b2     : (Cmid, 1)     folded BN2 shift
      w2s    : (9, G, Cmid)  3x3 conv weight, tap-major (t = ky*3 + kx)
    """
    prepped = []
    for (g1, be1, m1, v1, w1, g2, be2, m2, v2, w2) in block_params:
        s1 = g1 / jnp.sqrt(v1 + EPS)
        b1 = be1 - m1 * s1
        s2 = g2 / jnp.sqrt(v2 + EPS)
        b2 = be2 - m2 * s2
        cin, cmid = w1.shape
        growth = w2.shape[3]
        w1p = w1.T * s2[:, None]                               # (Cmid, Cin)
        w2s = jnp.transpose(w2, (0, 1, 3, 2)).reshape(9, growth, cmid)
        prepped.append((s1.reshape(cin, 1), b1.reshape(cin, 1), w1p,
                        b2.reshape(cmid, 1), w2s))
    return tuple(prepped)


# ----------------------------------------------------------------------------
# Synthetic parameter init (torch-like layout: BN stats + conv weights)
# ----------------------------------------------------------------------------
def init_dense_block_params(key, num_layers, in_channels, growth_rate, bn_size):
    params = []
    c = in_channels
    cmid = bn_size * growth_rate
    for i in range(num_layers):
        k = jax.random.split(jax.random.fold_in(key, i), 10)
        g1 = 1.0 + 0.1 * jax.random.normal(k[0], (c,), jnp.float32)
        be1 = 0.1 * jax.random.normal(k[1], (c,), jnp.float32)
        m1 = 0.1 * jax.random.normal(k[2], (c,), jnp.float32)
        v1 = 1.0 + 0.1 * jax.random.uniform(k[3], (c,), jnp.float32)
        # Conv1x1 weight stored (Cin, Cmid): w1[c, m] == torch W1[m, c]
        w1 = jax.random.normal(k[4], (c, cmid), jnp.float32) / jnp.sqrt(c)
        g2 = 1.0 + 0.1 * jax.random.normal(k[5], (cmid,), jnp.float32)
        be2 = 0.1 * jax.random.normal(k[6], (cmid,), jnp.float32)
        m2 = 0.1 * jax.random.normal(k[7], (cmid,), jnp.float32)
        v2 = 1.0 + 0.1 * jax.random.uniform(k[8], (cmid,), jnp.float32)
        # Conv3x3 weight stored HWIO (3,3,Cmid,G): [ky,kx,c,g] == torch [g,c,ky,kx]
        w2 = jax.random.normal(k[9], (3, 3, cmid, growth_rate),
                               jnp.float32) / jnp.sqrt(9.0 * cmid)
        params.append((g1, be1, m1, v1, w1, g2, be2, m2, v2, w2))
        c += growth_rate
    return params


# ----------------------------------------------------------------------------
# Pure-JAX reference (eval-mode BN, lax.conv, HIGHEST precision)
# ----------------------------------------------------------------------------
def dense_block_ref(x_nchw, block_params):
    x = jnp.transpose(x_nchw, (0, 2, 3, 1))
    dn = ("NHWC", "HWIO", "NHWC")
    for (g1, be1, m1, v1, w1, g2, be2, m2, v2, w2) in block_params:
        a1 = jnp.maximum((x - m1) * (g1 / jnp.sqrt(v1 + EPS)) + be1, 0.0)
        mid = lax.conv_general_dilated(
            a1, w1.reshape(1, 1, *w1.shape), (1, 1), "VALID",
            dimension_numbers=dn, precision=lax.Precision.HIGHEST)
        a2 = jnp.maximum((mid - m2) * (g2 / jnp.sqrt(v2 + EPS)) + be2, 0.0)
        nf = lax.conv_general_dilated(
            a2, w2, (1, 1), ((1, 1), (1, 1)),
            dimension_numbers=dn, precision=lax.Precision.HIGHEST)
        x = jnp.concatenate([x, nf], axis=-1)
    return jnp.transpose(x, (0, 3, 1, 2))


if __name__ == "__main__":
    # DenseBlock(num_layers=2, in_channels=4, growth_rate=4, bn_size=2,
    #            drop_rate=0.0); input NCHW = (2, 4, 16, 16)
    num_layers, in_channels, growth_rate, bn_size = 2, 4, 4, 2
    key = jax.random.PRNGKey(0)
    kx, kp = jax.random.split(key)

    x = jax.random.normal(kx, (2, in_channels, 16, 16), jnp.float32)
    raw_params = init_dense_block_params(kp, num_layers, in_channels,
                                         growth_rate, bn_size)
    prepped = prepare_block_params(raw_params)    # hoisted out of the jit

    fwd = jax.jit(dense_block_forward)
    out = jax.block_until_ready(fwd(x, prepped))

    ref = jax.block_until_ready(dense_block_ref(x, raw_params))

    assert out.shape == (2, in_channels + num_layers * growth_rate, 16, 16), \
        out.shape
    max_err = float(jnp.max(jnp.abs(out - ref)))
    assert jnp.allclose(out, ref, rtol=2e-3, atol=2e-3), max_err
    print("KERNEL_OK")
</pallas_src>

<mosaic_0001>
module attributes {stable_mosaic.version = 11 : i64} {
  func.func @kernel(%arg0: i32, %arg1: memref<1x4x256xf32, #tpu.memory_space<vmem>>, %arg2: memref<9x256xf32, #tpu.memory_space<vmem>>, %arg3: memref<4x1xf32, #tpu.memory_space<vmem>>, %arg4: memref<4x1xf32, #tpu.memory_space<vmem>>, %arg5: memref<8x4xf32, #tpu.memory_space<vmem>>, %arg6: memref<8x1xf32, #tpu.memory_space<vmem>>, %arg7: memref<9x4x8xf32, #tpu.memory_space<vmem>>, %arg8: memref<8x1xf32, #tpu.memory_space<vmem>>, %arg9: memref<8x1xf32, #tpu.memory_space<vmem>>, %arg10: memref<8x8xf32, #tpu.memory_space<vmem>>, %arg11: memref<8x1xf32, #tpu.memory_space<vmem>>, %arg12: memref<9x4x8xf32, #tpu.memory_space<vmem>>, %arg13: memref<1x12x256xf32, #tpu.memory_space<vmem>>) attributes {dimension_semantics = [#tpu.dimension_semantics<parallel>], iteration_bounds = array<i64: 2>, scalar_prefetch = 0 : i64, scratch_operands = 0 : i64, tpu.core_type = #tpu.core_type<tc>, window_params = [{transform_indices = @transform_0, window_bounds = array<i64: 1, 4, 256>}, {pipeline_mode = #tpu.pipeline_mode<synchronous>, transform_indices = @transform_1, window_bounds = array<i64: 9, 256>}, {pipeline_mode = #tpu.pipeline_mode<synchronous>, transform_indices = @transform_2, window_bounds = array<i64: 4, 1>}, {pipeline_mode = #tpu.pipeline_mode<synchronous>, transform_indices = @transform_3, window_bounds = array<i64: 4, 1>}, {pipeline_mode = #tpu.pipeline_mode<synchronous>, transform_indices = @transform_4, window_bounds = array<i64: 8, 4>}, {pipeline_mode = #tpu.pipeline_mode<synchronous>, transform_indices = @transform_5, window_bounds = array<i64: 8, 1>}, {pipeline_mode = #tpu.pipeline_mode<synchronous>, transform_indices = @transform_6, window_bounds = array<i64: 9, 4, 8>}, {pipeline_mode = #tpu.pipeline_mode<synchronous>, transform_indices = @transform_7, window_bounds = array<i64: 8, 1>}, {pipeline_mode = #tpu.pipeline_mode<synchronous>, transform_indices = @transform_8, window_bounds = array<i64: 8, 1>}, {pipeline_mode = #tpu.pipeline_mode<synchronous>, transform_indices = @transform_9, window_bounds = array<i64: 8, 8>}, {pipeline_mode = #tpu.pipeline_mode<synchronous>, transform_indices = @transform_10, window_bounds = array<i64: 8, 1>}, {pipeline_mode = #tpu.pipeline_mode<synchronous>, transform_indices = @transform_11, window_bounds = array<i64: 9, 4, 8>}, {transform_indices = @transform_12, window_bounds = array<i64: 1, 12, 256>}]} {
    %c0 = arith.constant 0 : index
    %c0_0 = arith.constant 0 : index
    %c0_1 = arith.constant 0 : index
    %0 = vector.load %arg1[%c0, %c0_0, %c0_1] : memref<1x4x256xf32, #tpu.memory_space<vmem>>, vector<1x4x256xf32>
    %1 = vector.shape_cast %0 : vector<1x4x256xf32> to vector<4x256xf32>
    %c0_2 = arith.constant 0 : index
    %c0_3 = arith.constant 0 : index
    %c0_4 = arith.constant 0 : index
    %2 = vector.load %arg13[%c0_2, %c0_3, %c0_4] : memref<1x12x256xf32, #tpu.memory_space<vmem>>, vector<1x4x256xf32>
    %3 = vector.shape_cast %2 : vector<1x4x256xf32> to vector<4x256xf32>
    %4 = vector.shape_cast %1 : vector<4x256xf32> to vector<1x4x256xf32>
    tpu.vector_store %arg13[%c0_2, %c0_3, %c0_4], %4 {strides = array<i32>} : memref<1x12x256xf32, #tpu.memory_space<vmem>>, vector<1x4x256xf32>,
    %c0_5 = arith.constant 0 : index
    %c0_6 = arith.constant 0 : index
    %c0_7 = arith.constant 0 : index
    %5 = vector.load %arg13[%c0_5, %c0_6, %c0_7] : memref<1x12x256xf32, #tpu.memory_space<vmem>>, vector<1x4x256xf32>
    %6 = vector.shape_cast %5 : vector<1x4x256xf32> to vector<4x256xf32>
    %c0_8 = arith.constant 0 : index
    %c0_9 = arith.constant 0 : index
    %7 = vector.load %arg3[%c0_8, %c0_9] : memref<4x1xf32, #tpu.memory_space<vmem>>, vector<4x1xf32>
    %8 = vector.broadcast %7 : vector<4x1xf32> to vector<4x256xf32>
    %9 = arith.mulf %6, %8 : vector<4x256xf32>
    %c0_10 = arith.constant 0 : index
    %c0_11 = arith.constant 0 : index
    %10 = vector.load %arg4[%c0_10, %c0_11] : memref<4x1xf32, #tpu.memory_space<vmem>>, vector<4x1xf32>
    %11 = vector.broadcast %10 : vector<4x1xf32> to vector<4x256xf32>
    %12 = arith.addf %9, %11 : vector<4x256xf32>
    %cst = arith.constant 0.000000e+00 : f32
    %13 = vector.broadcast %cst : f32 to vector<4x256xf32>
    %14 = arith.maximumf %12, %13 : vector<4x256xf32>
    %c0_12 = arith.constant 0 : index
    %c0_13 = arith.constant 0 : index
    %15 = vector.load %arg5[%c0_12, %c0_13] : memref<8x4xf32, #tpu.memory_space<vmem>>, vector<8x4xf32>
    %cst_14 = arith.constant dense<0.000000e+00> : vector<8x256xf32>
    %16 = tpu.matmul %15, %14, %cst_14 {dimension_numbers = #tpu.dot_dimension_numbers<[1], [0], [0], [1], [0, 0, 1, 1], [], []>} : vector<8x4xf32>, vector<4x256xf32>, vector<8x256xf32> -> vector<8x256xf32>
    %c0_15 = arith.constant 0 : index
    %c0_16 = arith.constant 0 : index
    %17 = vector.load %arg6[%c0_15, %c0_16] : memref<8x1xf32, #tpu.memory_space<vmem>>, vector<8x1xf32>
    %18 = vector.broadcast %17 : vector<8x1xf32> to vector<8x256xf32>
    %19 = arith.addf %16, %18 : vector<8x256xf32>
    %cst_17 = arith.constant 0.000000e+00 : f32
    %20 = vector.broadcast %cst_17 : f32 to vector<8x256xf32>
    %21 = arith.maximumf %19, %20 : vector<8x256xf32>
    %c4 = arith.constant 4 : index
    %c0_18 = arith.constant 0 : index
    %c0_19 = arith.constant 0 : index
    %22 = vector.load %arg7[%c4, %c0_18, %c0_19] : memref<9x4x8xf32, #tpu.memory_space<vmem>>, vector<1x4x8xf32>
    %23 = vector.shape_cast %22 : vector<1x4x8xf32> to vector<4x8xf32>
    %cst_20 = arith.constant dense<0.000000e+00> : vector<4x256xf32>
    %24 = tpu.matmul %23, %21, %cst_20 {dimension_numbers = #tpu.dot_dimension_numbers<[1], [0], [0], [1], [0, 0, 1, 1], [], []>} : vector<4x8xf32>, vector<8x256xf32>, vector<4x256xf32> -> vector<4x256xf32>
    %c17_i32 = arith.constant 17 : i32
    %25 = tpu.dynamic_rotate %21 by %c17_i32 dim 1 : vector<8x256xf32>, i32 -> vector<8x256xf32>
    %c0_21 = arith.constant 0 : index
    %c0_22 = arith.constant 0 : index
    %26 = vector.load %arg2[%c0_21, %c0_22] : memref<9x256xf32, #tpu.memory_space<vmem>>, vector<1x256xf32>
    %27 = vector.broadcast %26 : vector<1x256xf32> to vector<8x256xf32>
    %28 = arith.mulf %25, %27 : vector<8x256xf32>
    %c0_23 = arith.constant 0 : index
    %c0_24 = arith.constant 0 : index
    %c0_25 = arith.constant 0 : index
    %29 = vector.load %arg7[%c0_23, %c0_24, %c0_25] : memref<9x4x8xf32, #tpu.memory_space<vmem>>, vector<1x4x8xf32>
    %30 = vector.shape_cast %29 : vector<1x4x8xf32> to vector<4x8xf32>
    %cst_26 = arith.constant dense<0.000000e+00> : vector<4x256xf32>
    %31 = tpu.matmul %30, %28, %cst_26 {dimension_numbers = #tpu.dot_dimension_numbers<[1], [0], [0], [1], [0, 0, 1, 1], [], []>} : vector<4x8xf32>, vector<8x256xf32>, vector<4x256xf32> -> vector<4x256xf32>
    %32 = arith.addf %24, %31 : vector<4x256xf32>
    %c16_i32 = arith.constant 16 : i32
    %33 = tpu.dynamic_rotate %21 by %c16_i32 dim 1 : vector<8x256xf32>, i32 -> vector<8x256xf32>
    %c1 = arith.constant 1 : index
    %c0_27 = arith.constant 0 : index
    %34 = vector.load %arg2[%c1, %c0_27] : memref<9x256xf32, #tpu.memory_space<vmem>>, vector<1x256xf32>
    %35 = vector.broadcast %34 : vector<1x256xf32> to vector<8x256xf32>
    %36 = arith.mulf %33, %35 : vector<8x256xf32>
    %c1_28 = arith.constant 1 : index
    %c0_29 = arith.constant 0 : index
    %c0_30 = arith.constant 0 : index
    %37 = vector.load %arg7[%c1_28, %c0_29, %c0_30] : memref<9x4x8xf32, #tpu.memory_space<vmem>>, vector<1x4x8xf32>
    %38 = vector.shape_cast %37 : vector<1x4x8xf32> to vector<4x8xf32>
    %cst_31 = arith.constant dense<0.000000e+00> : vector<4x256xf32>
    %39 = tpu.matmul %38, %36, %cst_31 {dimension_numbers = #tpu.dot_dimension_numbers<[1], [0], [0], [1], [0, 0, 1, 1], [], []>} : vector<4x8xf32>, vector<8x256xf32>, vector<4x256xf32> -> vector<4x256xf32>
    %40 = arith.addf %32, %39 : vector<4x256xf32>
    %c15_i32 = arith.constant 15 : i32
    %41 = tpu.dynamic_rotate %21 by %c15_i32 dim 1 : vector<8x256xf32>, i32 -> vector<8x256xf32>
    %c2 = arith.constant 2 : index
    %c0_32 = arith.constant 0 : index
    %42 = vector.load %arg2[%c2, %c0_32] : memref<9x256xf32, #tpu.memory_space<vmem>>, vector<1x256xf32>
    %43 = vector.broadcast %42 : vector<1x256xf32> to vector<8x256xf32>
    %44 = arith.mulf %41, %43 : vector<8x256xf32>
    %c2_33 = arith.constant 2 : index
    %c0_34 = arith.constant 0 : index
    %c0_35 = arith.constant 0 : index
    %45 = vector.load %arg7[%c2_33, %c0_34, %c0_35] : memref<9x4x8xf32, #tpu.memory_space<vmem>>, vector<1x4x8xf32>
    %46 = vector.shape_cast %45 : vector<1x4x8xf32> to vector<4x8xf32>
    %cst_36 = arith.constant dense<0.000000e+00> : vector<4x256xf32>
    %47 = tpu.matmul %46, %44, %cst_36 {dimension_numbers = #tpu.dot_dimension_numbers<[1], [0], [0], [1], [0, 0, 1, 1], [], []>} : vector<4x8xf32>, vector<8x256xf32>, vector<4x256xf32> -> vector<4x256xf32>
    %48 = arith.addf %40, %47 : vector<4x256xf32>
    %c1_i32 = arith.constant 1 : i32
    %49 = tpu.dynamic_rotate %21 by %c1_i32 dim 1 : vector<8x256xf32>, i32 -> vector<8x256xf32>
    %c3 = arith.constant 3 : index
    %c0_37 = arith.constant 0 : index
    %50 = vector.load %arg2[%c3, %c0_37] : memref<9x256xf32, #tpu.memory_space<vmem>>, vector<1x256xf32>
    %51 = vector.broadcast %50 : vector<1x256xf32> to vector<8x256xf32>
    %52 = arith.mulf %49, %51 : vector<8x256xf32>
    %c3_38 = arith.constant 3 : index
    %c0_39 = arith.constant 0 : index
    %c0_40 = arith.constant 0 : index
    %53 = vector.load %arg7[%c3_38, %c0_39, %c0_40] : memref<9x4x8xf32, #tpu.memory_space<vmem>>, vector<1x4x8xf32>
    %54 = vector.shape_cast %53 : vector<1x4x8xf32> to vector<4x8xf32>
    %cst_41 = arith.constant dense<0.000000e+00> : vector<4x256xf32>
    %55 = tpu.matmul %54, %52, %cst_41 {dimension_numbers = #tpu.dot_dimension_numbers<[1], [0], [0], [1], [0, 0, 1, 1], [], []>} : vector<4x8xf32>, vector<8x256xf32>, vector<4x256xf32> -> vector<4x256xf32>
    %56 = arith.addf %48, %55 : vector<4x256xf32>
    %c255_i32 = arith.constant 255 : i32
    %57 = tpu.dynamic_rotate %21 by %c255_i32 dim 1 : vector<8x256xf32>, i32 -> vector<8x256xf32>
    %c5 = arith.constant 5 : index
    %c0_42 = arith.constant 0 : index
    %58 = vector.load %arg2[%c5, %c0_42] : memref<9x256xf32, #tpu.memory_space<vmem>>, vector<1x256xf32>
    %59 = vector.broadcast %58 : vector<1x256xf32> to vector<8x256xf32>
    %60 = arith.mulf %57, %59 : vector<8x256xf32>
    %c5_43 = arith.constant 5 : index
    %c0_44 = arith.constant 0 : index
    %c0_45 = arith.constant 0 : index
    %61 = vector.load %arg7[%c5_43, %c0_44, %c0_45] : memref<9x4x8xf32, #tpu.memory_space<vmem>>, vector<1x4x8xf32>
    %62 = vector.shape_cast %61 : vector<1x4x8xf32> to vector<4x8xf32>
    %cst_46 = arith.constant dense<0.000000e+00> : vector<4x256xf32>
    %63 = tpu.matmul %62, %60, %cst_46 {dimension_numbers = #tpu.dot_dimension_numbers<[1], [0], [0], [1], [0, 0, 1, 1], [], []>} : vector<4x8xf32>, vector<8x256xf32>, vector<4x256xf32> -> vector<4x256xf32>
    %64 = arith.addf %56, %63 : vector<4x256xf32>
    %c241_i32 = arith.constant 241 : i32
    %65 = tpu.dynamic_rotate %21 by %c241_i32 dim 1 : vector<8x256xf32>, i32 -> vector<8x256xf32>
    %c6 = arith.constant 6 : index
    %c0_47 = arith.constant 0 : index
    %66 = vector.load %arg2[%c6, %c0_47] : memref<9x256xf32, #tpu.memory_space<vmem>>, vector<1x256xf32>
    %67 = vector.broadcast %66 : vector<1x256xf32> to vector<8x256xf32>
    %68 = arith.mulf %65, %67 : vector<8x256xf32>
    %c6_48 = arith.constant 6 : index
    %c0_49 = arith.constant 0 : index
    %c0_50 = arith.constant 0 : index
    %69 = vector.load %arg7[%c6_48, %c0_49, %c0_50] : memref<9x4x8xf32, #tpu.memory_space<vmem>>, vector<1x4x8xf32>
    %70 = vector.shape_cast %69 : vector<1x4x8xf32> to vector<4x8xf32>
    %cst_51 = arith.constant dense<0.000000e+00> : vector<4x256xf32>
    %71 = tpu.matmul %70, %68, %cst_51 {dimension_numbers = #tpu.dot_dimension_numbers<[1], [0], [0], [1], [0, 0, 1, 1], [], []>} : vector<4x8xf32>, vector<8x256xf32>, vector<4x256xf32> -> vector<4x256xf32>
    %72 = arith.addf %64, %71 : vector<4x256xf32>
    %c240_i32 = arith.constant 240 : i32
    %73 = tpu.dynamic_rotate %21 by %c240_i32 dim 1 : vector<8x256xf32>, i32 -> vector<8x256xf32>
    %c7 = arith.constant 7 : index
    %c0_52 = arith.constant 0 : index
    %74 = vector.load %arg2[%c7, %c0_52] : memref<9x256xf32, #tpu.memory_space<vmem>>, vector<1x256xf32>
    %75 = vector.broadcast %74 : vector<1x256xf32> to vector<8x256xf32>
    %76 = arith.mulf %73, %75 : vector<8x256xf32>
    %c7_53 = arith.constant 7 : index
    %c0_54 = arith.constant 0 : index
    %c0_55 = arith.constant 0 : index
    %77 = vector.load %arg7[%c7_53, %c0_54, %c0_55] : memref<9x4x8xf32, #tpu.memory_space<vmem>>, vector<1x4x8xf32>
    %78 = vector.shape_cast %77 : vector<1x4x8xf32> to vector<4x8xf32>
    %cst_56 = arith.constant dense<0.000000e+00> : vector<4x256xf32>
    %79 = tpu.matmul %78, %76, %cst_56 {dimension_numbers = #tpu.dot_dimension_numbers<[1], [0], [0], [1], [0, 0, 1, 1], [], []>} : vector<4x8xf32>, vector<8x256xf32>, vector<4x256xf32> -> vector<4x256xf32>
    %80 = arith.addf %72, %79 : vector<4x256xf32>
    %c239_i32 = arith.constant 239 : i32
    %81 = tpu.dynamic_rotate %21 by %c239_i32 dim 1 : vector<8x256xf32>, i32 -> vector<8x256xf32>
    %c8 = arith.constant 8 : index
    %c0_57 = arith.constant 0 : index
    %82 = vector.load %arg2[%c8, %c0_57] : memref<9x256xf32, #tpu.memory_space<vmem>>, vector<1x256xf32>
    %83 = vector.broadcast %82 : vector<1x256xf32> to vector<8x256xf32>
    %84 = arith.mulf %81, %83 : vector<8x256xf32>
    %c8_58 = arith.constant 8 : index
    %c0_59 = arith.constant 0 : index
    %c0_60 = arith.constant 0 : index
    %85 = vector.load %arg7[%c8_58, %c0_59, %c0_60] : memref<9x4x8xf32, #tpu.memory_space<vmem>>, vector<1x4x8xf32>
    %86 = vector.shape_cast %85 : vector<1x4x8xf32> to vector<4x8xf32>
    %cst_61 = arith.constant dense<0.000000e+00> : vector<4x256xf32>
    %87 = tpu.matmul %86, %84, %cst_61 {dimension_numbers = #tpu.dot_dimension_numbers<[1], [0], [0], [1], [0, 0, 1, 1], [], []>} : vector<4x8xf32>, vector<8x256xf32>, vector<4x256xf32> -> vector<4x256xf32>
    %88 = arith.addf %80, %87 : vector<4x256xf32>
    %c0_62 = arith.constant 0 : index
    %c4_63 = arith.constant 4 : index
    %c0_64 = arith.constant 0 : index
    %89 = vector.load %arg13[%c0_62, %c4_63, %c0_64] : memref<1x12x256xf32, #tpu.memory_space<vmem>>, vector<1x4x256xf32>
    %90 = vector.shape_cast %89 : vector<1x4x256xf32> to vector<4x256xf32>
    %91 = vector.shape_cast %88 : vector<4x256xf32> to vector<1x4x256xf32>
    tpu.vector_store %arg13[%c0_62, %c4_63, %c0_64], %91 {strides = array<i32>} : memref<1x12x256xf32, #tpu.memory_space<vmem>>, vector<1x4x256xf32>,
    %c0_65 = arith.constant 0 : index
    %c0_66 = arith.constant 0 : index
    %c0_67 = arith.constant 0 : index
    %92 = vector.load %arg13[%c0_65, %c0_66, %c0_67] : memref<1x12x256xf32, #tpu.memory_space<vmem>>, vector<1x8x256xf32>
    %93 = vector.shape_cast %92 : vector<1x8x256xf32> to vector<8x256xf32>
    %c0_68 = arith.constant 0 : index
    %c0_69 = arith.constant 0 : index
    %94 = vector.load %arg8[%c0_68, %c0_69] : memref<8x1xf32, #tpu.memory_space<vmem>>, vector<8x1xf32>
    %95 = vector.broadcast %94 : vector<8x1xf32> to vector<8x256xf32>
    %96 = arith.mulf %93, %95 : vector<8x256xf32>
    %c0_70 = arith.constant 0 : index
    %c0_71 = arith.constant 0 : index
    %97 = vector.load %arg9[%c0_70, %c0_71] : memref<8x1xf32, #tpu.memory_space<vmem>>, vector<8x1xf32>
    %98 = vector.broadcast %97 : vector<8x1xf32> to vector<8x256xf32>
    %99 = arith.addf %96, %98 : vector<8x256xf32>
    %cst_72 = arith.constant 0.000000e+00 : f32
    %100 = vector.broadcast %cst_72 : f32 to vector<8x256xf32>
    %101 = arith.maximumf %99, %100 : vector<8x256xf32>
    %c0_73 = arith.constant 0 : index
    %c0_74 = arith.constant 0 : index
    %102 = vector.load %arg10[%c0_73, %c0_74] : memref<8x8xf32, #tpu.memory_space<vmem>>, vector<8x8xf32>
    %cst_75 = arith.constant dense<0.000000e+00> : vector<8x256xf32>
    %103 = tpu.matmul %102, %101, %cst_75 {dimension_numbers = #tpu.dot_dimension_numbers<[1], [0], [0], [1], [0, 0, 1, 1], [], []>} : vector<8x8xf32>, vector<8x256xf32>, vector<8x256xf32> -> vector<8x256xf32>
    %c0_76 = arith.constant 0 : index
    %c0_77 = arith.constant 0 : index
    %104 = vector.load %arg11[%c0_76, %c0_77] : memref<8x1xf32, #tpu.memory_space<vmem>>, vector<8x1xf32>
    %105 = vector.broadcast %104 : vector<8x1xf32> to vector<8x256xf32>
    %106 = arith.addf %103, %105 : vector<8x256xf32>
    %cst_78 = arith.constant 0.000000e+00 : f32
    %107 = vector.broadcast %cst_78 : f32 to vector<8x256xf32>
    %108 = arith.maximumf %106, %107 : vector<8x256xf32>
    %c4_79 = arith.constant 4 : index
    %c0_80 = arith.constant 0 : index
    %c0_81 = arith.constant 0 : index
    %109 = vector.load %arg12[%c4_79, %c0_80, %c0_81] : memref<9x4x8xf32, #tpu.memory_space<vmem>>, vector<1x4x8xf32>
    %110 = vector.shape_cast %109 : vector<1x4x8xf32> to vector<4x8xf32>
    %cst_82 = arith.constant dense<0.000000e+00> : vector<4x256xf32>
    %111 = tpu.matmul %110, %108, %cst_82 {dimension_numbers = #tpu.dot_dimension_numbers<[1], [0], [0], [1], [0, 0, 1, 1], [], []>} : vector<4x8xf32>, vector<8x256xf32>, vector<4x256xf32> -> vector<4x256xf32>
    %c17_i32_83 = arith.constant 17 : i32
    %112 = tpu.dynamic_rotate %108 by %c17_i32_83 dim 1 : vector<8x256xf32>, i32 -> vector<8x256xf32>
    %c0_84 = arith.constant 0 : index
    %c0_85 = arith.constant 0 : index
    %113 = vector.load %arg2[%c0_84, %c0_85] : memref<9x256xf32, #tpu.memory_space<vmem>>, vector<1x256xf32>
    %114 = vector.broadcast %113 : vector<1x256xf32> to vector<8x256xf32>
    %115 = arith.mulf %112, %114 : vector<8x256xf32>
    %c0_86 = arith.constant 0 : index
    %c0_87 = arith.constant 0 : index
    %c0_88 = arith.constant 0 : index
    %116 = vector.load %arg12[%c0_86, %c0_87, %c0_88] : memref<9x4x8xf32, #tpu.memory_space<vmem>>, vector<1x4x8xf32>
    %117 = vector.shape_cast %116 : vector<1x4x8xf32> to vector<4x8xf32>
    %cst_89 = arith.constant dense<0.000000e+00> : vector<4x256xf32>
    %118 = tpu.matmul %117, %115, %cst_89 {dimension_numbers = #tpu.dot_dimension_numbers<[1], [0], [0], [1], [0, 0, 1, 1], [], []>} : vector<4x8xf32>, vector<8x256xf32>, vector<4x256xf32> -> vector<4x256xf32>
    %119 = arith.addf %111, %118 : vector<4x256xf32>
    %c16_i32_90 = arith.constant 16 : i32
    %120 = tpu.dynamic_rotate %108 by %c16_i32_90 dim 1 : vector<8x256xf32>, i32 -> vector<8x256xf32>
    %c1_91 = arith.constant 1 : index
    %c0_92 = arith.constant 0 : index
    %121 = vector.load %arg2[%c1_91, %c0_92] : memref<9x256xf32, #tpu.memory_space<vmem>>, vector<1x256xf32>
    %122 = vector.broadcast %121 : vector<1x256xf32> to vector<8x256xf32>
    %123 = arith.mulf %120, %122 : vector<8x256xf32>
    %c1_93 = arith.constant 1 : index
    %c0_94 = arith.constant 0 : index
    %c0_95 = arith.constant 0 : index
    %124 = vector.load %arg12[%c1_93, %c0_94, %c0_95] : memref<9x4x8xf32, #tpu.memory_space<vmem>>, vector<1x4x8xf32>
    %125 = vector.shape_cast %124 : vector<1x4x8xf32> to vector<4x8xf32>
    %cst_96 = arith.constant dense<0.000000e+00> : vector<4x256xf32>
    %126 = tpu.matmul %125, %123, %cst_96 {dimension_numbers = #tpu.dot_dimension_numbers<[1], [0], [0], [1], [0, 0, 1, 1], [], []>} : vector<4x8xf32>, vector<8x256xf32>, vector<4x256xf32> -> vector<4x256xf32>
    %127 = arith.addf %119, %126 : vector<4x256xf32>
    %c15_i32_97 = arith.constant 15 : i32
    %128 = tpu.dynamic_rotate %108 by %c15_i32_97 dim 1 : vector<8x256xf32>, i32 -> vector<8x256xf32>
    %c2_98 = arith.constant 2 : index
    %c0_99 = arith.constant 0 : index
    %129 = vector.load %arg2[%c2_98, %c0_99] : memref<9x256xf32, #tpu.memory_space<vmem>>, vector<1x256xf32>
    %130 = vector.broadcast %129 : vector<1x256xf32> to vector<8x256xf32>
    %131 = arith.mulf %128, %130 : vector<8x256xf32>
    %c2_100 = arith.constant 2 : index
    %c0_101 = arith.constant 0 : index
    %c0_102 = arith.constant 0 : index
    %132 = vector.load %arg12[%c2_100, %c0_101, %c0_102] : memref<9x4x8xf32, #tpu.memory_space<vmem>>, vector<1x4x8xf32>
    %133 = vector.shape_cast %132 : vector<1x4x8xf32> to vector<4x8xf32>
    %cst_103 = arith.constant dense<0.000000e+00> : vector<4x256xf32>
    %134 = tpu.matmul %133, %131, %cst_103 {dimension_numbers = #tpu.dot_dimension_numbers<[1], [0], [0], [1], [0, 0, 1, 1], [], []>} : vector<4x8xf32>, vector<8x256xf32>, vector<4x256xf32> -> vector<4x256xf32>
    %135 = arith.addf %127, %134 : vector<4x256xf32>
    %c1_i32_104 = arith.constant 1 : i32
    %136 = tpu.dynamic_rotate %108 by %c1_i32_104 dim 1 : vector<8x256xf32>, i32 -> vector<8x256xf32>
    %c3_105 = arith.constant 3 : index
    %c0_106 = arith.constant 0 : index
    %137 = vector.load %arg2[%c3_105, %c0_106] : memref<9x256xf32, #tpu.memory_space<vmem>>, vector<1x256xf32>
    %138 = vector.broadcast %137 : vector<1x256xf32> to vector<8x256xf32>
    %139 = arith.mulf %136, %138 : vector<8x256xf32>
    %c3_107 = arith.constant 3 : index
    %c0_108 = arith.constant 0 : index
    %c0_109 = arith.constant 0 : index
    %140 = vector.load %arg12[%c3_107, %c0_108, %c0_109] : memref<9x4x8xf32, #tpu.memory_space<vmem>>, vector<1x4x8xf32>
    %141 = vector.shape_cast %140 : vector<1x4x8xf32> to vector<4x8xf32>
    %cst_110 = arith.constant dense<0.000000e+00> : vector<4x256xf32>
    %142 = tpu.matmul %141, %139, %cst_110 {dimension_numbers = #tpu.dot_dimension_numbers<[1], [0], [0], [1], [0, 0, 1, 1], [], []>} : vector<4x8xf32>, vector<8x256xf32>, vector<4x256xf32> -> vector<4x256xf32>
    %143 = arith.addf %135, %142 : vector<4x256xf32>
    %c255_i32_111 = arith.constant 255 : i32
    %144 = tpu.dynamic_rotate %108 by %c255_i32_111 dim 1 : vector<8x256xf32>, i32 -> vector<8x256xf32>
    %c5_112 = arith.constant 5 : index
    %c0_113 = arith.constant 0 : index
    %145 = vector.load %arg2[%c5_112, %c0_113] : memref<9x256xf32, #tpu.memory_space<vmem>>, vector<1x256xf32>
    %146 = vector.broadcast %145 : vector<1x256xf32> to vector<8x256xf32>
    %147 = arith.mulf %144, %146 : vector<8x256xf32>
    %c5_114 = arith.constant 5 : index
    %c0_115 = arith.constant 0 : index
    %c0_116 = arith.constant 0 : index
    %148 = vector.load %arg12[%c5_114, %c0_115, %c0_116] : memref<9x4x8xf32, #tpu.memory_space<vmem>>, vector<1x4x8xf32>
    %149 = vector.shape_cast %148 : vector<1x4x8xf32> to vector<4x8xf32>
    %cst_117 = arith.constant dense<0.000000e+00> : vector<4x256xf32>
    %150 = tpu.matmul %149, %147, %cst_117 {dimension_numbers = #tpu.dot_dimension_numbers<[1], [0], [0], [1], [0, 0, 1, 1], [], []>} : vector<4x8xf32>, vector<8x256xf32>, vector<4x256xf32> -> vector<4x256xf32>
    %151 = arith.addf %143, %150 : vector<4x256xf32>
    %c241_i32_118 = arith.constant 241 : i32
    %152 = tpu.dynamic_rotate %108 by %c241_i32_118 dim 1 : vector<8x256xf32>, i32 -> vector<8x256xf32>
    %c6_119 = arith.constant 6 : index
    %c0_120 = arith.constant 0 : index
    %153 = vector.load %arg2[%c6_119, %c0_120] : memref<9x256xf32, #tpu.memory_space<vmem>>, vector<1x256xf32>
    %154 = vector.broadcast %153 : vector<1x256xf32> to vector<8x256xf32>
    %155 = arith.mulf %152, %154 : vector<8x256xf32>
    %c6_121 = arith.constant 6 : index
    %c0_122 = arith.constant 0 : index
    %c0_123 = arith.constant 0 : index
    %156 = vector.load %arg12[%c6_121, %c0_122, %c0_123] : memref<9x4x8xf32, #tpu.memory_space<vmem>>, vector<1x4x8xf32>
    %157 = vector.shape_cast %156 : vector<1x4x8xf32> to vector<4x8xf32>
    %cst_124 = arith.constant dense<0.000000e+00> : vector<4x256xf32>
    %158 = tpu.matmul %157, %155, %cst_124 {dimension_numbers = #tpu.dot_dimension_numbers<[1], [0], [0], [1], [0, 0, 1, 1], [], []>} : vector<4x8xf32>, vector<8x256xf32>, vector<4x256xf32> -> vector<4x256xf32>
    %159 = arith.addf %151, %158 : vector<4x256xf32>
    %c240_i32_125 = arith.constant 240 : i32
    %160 = tpu.dynamic_rotate %108 by %c240_i32_125 dim 1 : vector<8x256xf32>, i32 -> vector<8x256xf32>
    %c7_126 = arith.constant 7 : index
    %c0_127 = arith.constant 0 : index
    %161 = vector.load %arg2[%c7_126, %c0_127] : memref<9x256xf32, #tpu.memory_space<vmem>>, vector<1x256xf32>
    %162 = vector.broadcast %161 : vector<1x256xf32> to vector<8x256xf32>
    %163 = arith.mulf %160, %162 : vector<8x256xf32>
    %c7_128 = arith.constant 7 : index
    %c0_129 = arith.constant 0 : index
    %c0_130 = arith.constant 0 : index
    %164 = vector.load %arg12[%c7_128, %c0_129, %c0_130] : memref<9x4x8xf32, #tpu.memory_space<vmem>>, vector<1x4x8xf32>
    %165 = vector.shape_cast %164 : vector<1x4x8xf32> to vector<4x8xf32>
    %cst_131 = arith.constant dense<0.000000e+00> : vector<4x256xf32>
    %166 = tpu.matmul %165, %163, %cst_131 {dimension_numbers = #tpu.dot_dimension_numbers<[1], [0], [0], [1], [0, 0, 1, 1], [], []>} : vector<4x8xf32>, vector<8x256xf32>, vector<4x256xf32> -> vector<4x256xf32>
    %167 = arith.addf %159, %166 : vector<4x256xf32>
    %c239_i32_132 = arith.constant 239 : i32
    %168 = tpu.dynamic_rotate %108 by %c239_i32_132 dim 1 : vector<8x256xf32>, i32 -> vector<8x256xf32>
    %c8_133 = arith.constant 8 : index
    %c0_134 = arith.constant 0 : index
    %169 = vector.load %arg2[%c8_133, %c0_134] : memref<9x256xf32, #tpu.memory_space<vmem>>, vector<1x256xf32>
    %170 = vector.broadcast %169 : vector<1x256xf32> to vector<8x256xf32>
    %171 = arith.mulf %168, %170 : vector<8x256xf32>
    %c8_135 = arith.constant 8 : index
    %c0_136 = arith.constant 0 : index
    %c0_137 = arith.constant 0 : index
    %172 = vector.load %arg12[%c8_135, %c0_136, %c0_137] : memref<9x4x8xf32, #tpu.memory_space<vmem>>, vector<1x4x8xf32>
    %173 = vector.shape_cast %172 : vector<1x4x8xf32> to vector<4x8xf32>
    %cst_138 = arith.constant dense<0.000000e+00> : vector<4x256xf32>
    %174 = tpu.matmul %173, %171, %cst_138 {dimension_numbers = #tpu.dot_dimension_numbers<[1], [0], [0], [1], [0, 0, 1, 1], [], []>} : vector<4x8xf32>, vector<8x256xf32>, vector<4x256xf32> -> vector<4x256xf32>
    %175 = arith.addf %167, %174 : vector<4x256xf32>
    %c0_139 = arith.constant 0 : index
    %c8_140 = arith.constant 8 : index
    %c0_141 = arith.constant 0 : index
    %176 = vector.load %arg13[%c0_139, %c8_140, %c0_141] : memref<1x12x256xf32, #tpu.memory_space<vmem>>, vector<1x4x256xf32>
    %177 = vector.shape_cast %176 : vector<1x4x256xf32> to vector<4x256xf32>
    %178 = vector.shape_cast %175 : vector<4x256xf32> to vector<1x4x256xf32>
    tpu.vector_store %arg13[%c0_139, %c8_140, %c0_141], %178 {strides = array<i32>} : memref<1x12x256xf32, #tpu.memory_space<vmem>>, vector<1x4x256xf32>,
    return
  }
  func.func @transform_0(%arg0: i32) -> (i32, i32, i32) {
    %c0_i32 = arith.constant 0 : i32
    %c0_i32_0 = arith.constant 0 : i32
    %c0_i32_1 = arith.constant 0 : i32
    return %arg0, %c0_i32, %c0_i32_0 : i32, i32, i32
  }
  func.func @transform_1(%arg0: i32) -> (i32, i32) {
    %c0_i32 = arith.constant 0 : i32
    %c0_i32_0 = arith.constant 0 : i32
    %c0_i32_1 = arith.constant 0 : i32
    return %c0_i32, %c0_i32_0 : i32, i32
  }
  func.func @transform_2(%arg0: i32) -> (i32, i32) {
    %c0_i32 = arith.constant 0 : i32
    %c0_i32_0 = arith.constant 0 : i32
    %c0_i32_1 = arith.constant 0 : i32
    return %c0_i32, %c0_i32_0 : i32, i32
  }
  func.func @transform_3(%arg0: i32) -> (i32, i32) {
    %c0_i32 = arith.constant 0 : i32
    %c0_i32_0 = arith.constant 0 : i32
    %c0_i32_1 = arith.constant 0 : i32
    return %c0_i32, %c0_i32_0 : i32, i32
  }
  func.func @transform_4(%arg0: i32) -> (i32, i32) {
    %c0_i32 = arith.constant 0 : i32
    %c0_i32_0 = arith.constant 0 : i32
    %c0_i32_1 = arith.constant 0 : i32
    return %c0_i32, %c0_i32_0 : i32, i32
  }
  func.func @transform_5(%arg0: i32) -> (i32, i32) {
    %c0_i32 = arith.constant 0 : i32
    %c0_i32_0 = arith.constant 0 : i32
    %c0_i32_1 = arith.constant 0 : i32
    return %c0_i32, %c0_i32_0 : i32, i32
  }
  func.func @transform_6(%arg0: i32) -> (i32, i32, i32) {
    %c0_i32 = arith.constant 0 : i32
    %c0_i32_0 = arith.constant 0 : i32
    %c0_i32_1 = arith.constant 0 : i32
    %c0_i32_2 = arith.constant 0 : i32
    return %c0_i32, %c0_i32_0, %c0_i32_1 : i32, i32, i32
  }
  func.func @transform_7(%arg0: i32) -> (i32, i32) {
    %c0_i32 = arith.constant 0 : i32
    %c0_i32_0 = arith.constant 0 : i32
    %c0_i32_1 = arith.constant 0 : i32
    return %c0_i32, %c0_i32_0 : i32, i32
  }
  func.func @transform_8(%arg0: i32) -> (i32, i32) {
    %c0_i32 = arith.constant 0 : i32
    %c0_i32_0 = arith.constant 0 : i32
    %c0_i32_1 = arith.constant 0 : i32
    return %c0_i32, %c0_i32_0 : i32, i32
  }
  func.func @transform_9(%arg0: i32) -> (i32, i32) {
    %c0_i32 = arith.constant 0 : i32
    %c0_i32_0 = arith.constant 0 : i32
    %c0_i32_1 = arith.constant 0 : i32
    return %c0_i32, %c0_i32_0 : i32, i32
  }
  func.func @transform_10(%arg0: i32) -> (i32, i32) {
    %c0_i32 = arith.constant 0 : i32
    %c0_i32_0 = arith.constant 0 : i32
    %c0_i32_1 = arith.constant 0 : i32
    return %c0_i32, %c0_i32_0 : i32, i32
  }
  func.func @transform_11(%arg0: i32) -> (i32, i32, i32) {
    %c0_i32 = arith.constant 0 : i32
    %c0_i32_0 = arith.constant 0 : i32
    %c0_i32_1 = arith.constant 0 : i32
    %c0_i32_2 = arith.constant 0 : i32
    return %c0_i32, %c0_i32_0, %c0_i32_1 : i32, i32, i32
  }
  func.func @transform_12(%arg0: i32) -> (i32, i32, i32) {
    %c0_i32 = arith.constant 0 : i32
    %c0_i32_0 = arith.constant 0 : i32
    %c0_i32_1 = arith.constant 0 : i32
    return %arg0, %c0_i32, %c0_i32_0 : i32, i32, i32
  }
}

</mosaic_0001>

<bundles_post_ra>
// kernel: dense_block_forward.1
= control target key start
LH: loop header
LB: loop body
LE: loop exit
PB: predicated region body
PF: predicated region fallthrough
CT: control target
= control target key end

     0   :  { %s2632_s21 = smov 0   ;;  %s2968_s0 = inlined_call_operand.vmem [shape: f32[2,4,256], index: 0, kind: input, shape index: {}]   ;;  %s2969_s1 = inlined_call_operand.vmem [shape: f32[9,256], index: 1, kind: input, shape index: {}]   ;;  %s2970_s2 = inlined_call_operand.vmem [shape: f32[4,1], index: 2, kind: input, shape index: {}]   ;;  %s2971_s3 = inlined_call_operand.vmem [shape: f32[4,1], index: 3, kind: input, shape index: {}]   ;;  %s2972_s4 = inlined_call_operand.vmem [shape: f32[8,4], index: 4, kind: input, shape index: {}]   ;;  %s2973_s5 = inlined_call_operand.vmem [shape: f32[8,1], index: 5, kind: input, shape index: {}]   ;;  %s2974_s6 = inlined_call_operand.vmem [shape: f32[9,4,8], index: 6, kind: input, shape index: {}]   ;;  %s2975_s7 = inlined_call_operand.vmem [shape: f32[8,1], index: 7, kind: input, shape index: {}]   ;;  %s2976_s8 = inlined_call_operand.vmem [shape: f32[8,1], index: 8, kind: input, shape index: {}]   ;;  %s2977_s9 = inlined_call_operand.vmem [shape: f32[8,8], index: 9, kind: input, shape index: {}]   ;;  %s2978_s10 = inlined_call_operand.vmem [shape: f32[8,1], index: 10, kind: input, shape index: {}]   ;;  %s2979_s11 = inlined_call_operand.vmem [shape: f32[9,4,8], index: 11, kind: input, shape index: {}]   ;;  %s2980_s12 = inlined_call_operand.vmem [shape: f32[2,12,256], index: 12, kind: output, shape index: {}]  }
   0x1 LB: > { %s2431_s22 = sadd.s32 4294967295, %s2555_s21   ;;  %p2435_p0 = scmp.ge.s32.totalorder %s2555_s21, 1  ;;  %s2555_s21 = sphi %s2632_s21, %s22_s21  }
   0x2   : > { %p362_p1 = scmp.lt.s32.totalorder %s2555_s21, 3 }
   0x4   : > { %p363_p2 = pnand %p2435_p0, %p362_p1 }
   0x5   : > { %v422_v0 = vld [vmem:[%s2970_s2] sm:$0xf] (!%p363_p2)  ;;  %p404_p3 = scmp.lt.s32.totalorder (!%p363_p2), %s2431_s22, 1  ;;  %v2557_v1 = vmov (!%p363_p2), 0   ;;  %v2558_v5 = vmov (!%p363_p2), 0.0   ;;  %vm451_vm0 = vcmask (!%p363_p2), 1043456   ;;  %v537_v28 = vlaneseq (!%p363_p2) }
   0x6   : > { %366 = sbr.rel (%p363_p2) target bundleno = 1392 (0x570), region = 68  ;;  %2546 = vset.pattern.permute.xlu0 (!%p363_p2), %v2557_v1  ;;  %2547 = vset.pattern.permute.xlu1 (!%p363_p2), %v2557_v1  ;;  %v430_v2 = vld [vmem:[%s2971_s3] sm:$0xf] (!%p363_p2)  ;;  %vm447_vm1 = vcmask (!%p363_p2), 31744   ;;  %s2560_s23 = smov (!%p363_p2), 16   ;;  %vm557_vm4 = vcmask (!%p363_p2), 64512  }
   0x7   : > { %425 = vperm.xlu0 (!%p363_p2), %2546, %v422_v0   ;;  %522 = vmatprep.mubr.f32.mxu1 (!%p363_p2), %v2558_v5  ;;  %v441_v6 = vld [vmem:[%s2973_s5] sm:$0xff] (!%p363_p2)  ;;  %s2561_s24 = smov (!%p363_p2), 15   ;;  %s2562_s25 = smov (!%p363_p2), 1   ;;  %v545_v29 = vshrl.u32 (!%p363_p2), %v537_v28, 7  ;;  %v2692_v30 = vand.u32 (!%p363_p2), 127, %v537_v28 }
   0x8   : > { %1508 = vmatprep.mubr.f32.mxu0 (!%p363_p2), %v2558_v5  ;;  %444 = vperm.xlu1 (!%p363_p2), %2547, %v441_v6   ;;  %v440_v17 = vld [vmem:[%s2972_s4] sm:$0xff] (!%p363_p2)  ;;  %s2563_s26 = smov (!%p363_p2), 127   ;;  %s2566_s29 = smov (!%p363_p2), 111   ;;  %v2443_v56 = vld [vmem:[%s2974_s6 + $0x10] sm:$0xf] (!%p363_p2) }
   0x9   : > { %v1416_v25 = vld [vmem:[%s2975_s7] sm:$0xff] (!%p363_p2)  ;;  %v2694_v31 = vsub.s32 (!%p363_p2), 0, %v545_v29  ;;  %v2696_v32 = vsub.s32 (!%p363_p2), 1, %v545_v29  ;;  %vm539_vm2 = vcmp.lt.s32.totalorder (!%p363_p2), %v2692_v30, 17  ;;  %vm710_vm3 = vcmp.lt.s32.totalorder (!%p363_p2), %v2692_v30, 16 }
   0xa   : > { %v1424_v26 = vld [vmem:[%s2976_s8] sm:$0xff] (!%p363_p2)  ;;  %vm810_vm5 = vcmp.lt.s32.totalorder (!%p363_p2), %v2692_v30, 15  ;;  %vm910_vm6 = vcmp.lt.s32.totalorder (!%p363_p2), %v2692_v30, 1  ;;  %vm1010_vm7 = vcmp.lt.s32.totalorder (!%p363_p2), %v2692_v30, 127  ;;  %vm1110_vm8 = vcmp.lt.s32.totalorder (!%p363_p2), %v2692_v30, 113 }
   0xb   : > { %433 = vperm.xlu0 (!%p363_p2), %2546, %v430_v2   ;;  %v1435_v27 = vld [vmem:[%s2978_s10] sm:$0xff] (!%p363_p2)  ;;  %vm1210_vm9 = vcmp.lt.s32.totalorder (!%p363_p2), %v2692_v30, 112  ;;  %vm1310_vm10 = vcmp.lt.s32.totalorder (!%p363_p2), %v2692_v30, 111 }
   0xc   : > { %v542_v33 = vld [vmem:[%s2969_s1] ss:$8 sm:$0x3] (!%p363_p2)  ;;  %v2446_v37 = vld [vmem:[%s2969_s1 + $0x1] ss:$8 sm:$0x3] (!%p363_p2) }
   0xd   : > { %s2982_s22 = smov (!%p404_p3, %s2431_s22), 1  ;;  %v547_v34 = vrot.slane %v542_v33, %v2694_v31  ;;  %v551_v35 = vrot.slane %v542_v33, %v2696_v32  ;;  %v723_v43 = vrot.slane %v2446_v37, %v2696_v32  ;;  %v556_v45 = vld [vmem:[%s2974_s6] sm:$0xf]  ;;  %v719_v52 = vrot.slane %v2446_v37, %v2694_v31  ;;  %v2447_v2 = vld [vmem:[%s2974_s6 + $0x4] sm:$0xf] }
   0xe   : > { %s2494_s27 = sshll.u32 %s2982_s22, 3  ;;  %s2495_s28 = sshll.u32 %s2982_s22, 5  ;;  %v2449_v49 = vld [vmem:[%s2969_s1 + $0x2] ss:$8 sm:$0x3] }
   0xf   : > { %s408_s13 = scalar_lea.vmem %s2968_s0, %s2494_s27  ;;  %s2652_s16 = scalar_lea.vmem %s2980_s12, %s2495_s28  ;;  %v823_v54 = vrot.slane %v2449_v49, %v2696_v32  ;;  %v2452_v59 = vld [vmem:[%s2969_s1 + $0x3] ss:$8 sm:$0x3]  ;;  %v819_v62 = vrot.slane %v2449_v49, %v2694_v31  ;;  %v2455_v6 = vld [vmem:[%s2969_s1 + $0x5] ss:$8 sm:$0x3] }
  0x10   : > { %v414_v3 = vld [vmem:[%s408_s13] sm:$0xff]  ;;  %s2559_s22 = smov 17   ;;  %s2564_s27 = smov 113   ;;  %v923_v0 = vrot.slane %v2452_v59, %v2696_v32 }
  0x11   : > { %v416_v4 = vcombine.high %v414_v3, %v414_v3  ;;  %418 = vst [vmem:[%s2652_s16] sm:$0xf] %v414_v3  ;;  %s2565_s28 = smov 112  }
  0x13   : > { %419 = vst [vmem:[%s2652_s16 + $0x8] sm:$0xf] %v416_v4 }
  0x18   : > { %v420_v8 = vld [vmem:[%s2652_s16] sm:$0xf] }
  0x1a   : > { %v421_v9 = vld [vmem:[%s2652_s16 + $0x8] sm:$0xf] }
  0x86   : > { %v426_v7 = vpop.permute.xlu0 %425 }
  0x87   : > { %v428_v10 = vmul.f32 %v426_v7, %v420_v8  ;;  %v429_v11 = vmul.f32 %v426_v7, %v421_v9  ;;  %v445_v18 = vpop.permute.xlu1 %444  ;;  %v919_v9 = vrot.slane %v2452_v59, %v2694_v31 }
  0x8a   : > { %v434_v12 = vpop.permute.xlu0 %433 }
  0x8b   : > { %v436_v13 = vadd.f32 %v434_v12, %v428_v10  ;;  %v437_v14 = vadd.f32 %v434_v12, %v429_v11  ;;  %v1023_v11 = vrot.slane %v2455_v6, %v2696_v32 }
  0x8d   : > { %v438_v15 = vmax.f32 %v436_v13, 0.0  ;;  %v439_v16 = vmax.f32 %v437_v14, 0.0  ;;  %v2450_v13 = vld [vmem:[%s2974_s6 + $0x8] sm:$0xf] }
  0x8f   : > { %2440 = vmatprep.subr.msk.mxu1 %vm451_vm0, %v439_v16  ;;  %v2458_v16 = vld [vmem:[%s2969_s1 + $0x6] ss:$8 sm:$0x3] }
  0x90   : > { %2441 = vmatpush1.msk.msra.mxu1 %vm451_vm0, %v438_v15  ;;  %v1119_v29 = vrot.slane %v2458_v16, %v2694_v31 }
  0x91   : > { %2442 = vmatmul.mubr.msk.f32.vlgmr.msra.gmra.mrb[0].mxu1 %vm447_vm1, %v440_v17 }
  0x92   : > { %625 = vmatprep.mubr.f32.mxu1 %v2558_v5 }
 0x164   : > { %v524_v19 = vpop.f32.mrb[0].mxu1 }
 0x165   : > { %v525_v20 = vadd.f32 %v524_v19, %v445_v18  ;;  %v526_v21 = vpop.f32.mrb[1].mxu1  ;;  %v1019_v19 = vrot.slane %v2455_v6, %v2694_v31 }
 0x166   : > { %v527_v22 = vadd.f32 %v526_v21, %v445_v18  ;;  %v1123_v21 = vrot.slane %v2458_v16, %v2696_v32 }
 0x167   : > { %v529_v23 = vmax.f32 %v525_v20, 0.0 }
 0x168   : > { %v530_v24 = vmax.f32 %v527_v22, 0.0 }
 0x169   : > { %533 = vrot.lane.b32.xlu1 %v529_v23, %s2559_s22 }
 0x16a   : > { %535 = vrot.lane.b32.xlu0 %v530_v24, %s2559_s22 }
 0x16d   : > { %706 = vrot.lane.b32.xlu1 %v529_v23, %s2560_s23 }
 0x16e   : > { %708 = vrot.lane.b32.xlu0 %v530_v24, %s2560_s23 }
 0x171   : > { %806 = vrot.lane.b32.xlu1 %v529_v23, %s2561_s24 }
 0x172   : > { %808 = vrot.lane.b32.xlu0 %v530_v24, %s2561_s24 }
 0x175   : > { %906 = vrot.lane.b32.xlu1 %v529_v23, %s2562_s25 }
 0x176   : > { %908 = vrot.lane.b32.xlu0 %v530_v24, %s2562_s25 }
 0x179   : > { %1006 = vrot.lane.b32.xlu1 %v529_v23, %s2563_s26 }
 0x17a   : > { %1008 = vrot.lane.b32.xlu0 %v530_v24, %s2563_s26 }
 0x17d   : > { %1106 = vrot.lane.b32.xlu1 %v529_v23, %s2564_s27 }
 0x17e   : > { %1108 = vrot.lane.b32.xlu0 %v530_v24, %s2564_s27 }
 0x181   : > { %1206 = vrot.lane.b32.xlu1 %v529_v23, %s2565_s28 }
 0x182   : > { %1208 = vrot.lane.b32.xlu0 %v530_v24, %s2565_s28 }
 0x185   : > { %1306 = vrot.lane.b32.xlu1 %v529_v23, %s2566_s29 }
 0x186   : > { %1308 = vrot.lane.b32.xlu0 %v530_v24, %s2566_s29 }
 0x189   : > { %1419 = vperm.xlu1 %2547, %v1416_v25  }
 0x18a   : > { %1427 = vperm.xlu0 %2546, %v1424_v26   ;;  %v2461_v26 = vld [vmem:[%s2969_s1 + $0x7] ss:$8 sm:$0x3] }
 0x18d   : > { %1438 = vperm.xlu1 %2547, %v1435_v27  }
 0x1db   : > { %v534_v36 = vpop.permute.xlu1 %533 }
 0x1dc   : > { %v536_v38 = vpop.permute.xlu0 %535 }
 0x1dd   : > { %v540_v39 = vsel %vm539_vm2, %v534_v36, %v536_v38  ;;  %v541_v40 = vsel %vm539_vm2, %v536_v38, %v534_v36  ;;  %v2456_v36 = vld [vmem:[%s2974_s6 + $0x14] sm:$0xf] }
 0x1de   : > { %v554_v41 = vmul.f32 %v547_v34, %v541_v40  ;;  %v555_v42 = vmul.f32 %v551_v35, %v540_v39  ;;  %v1223_v34 = vrot.slane %v2461_v26, %v2696_v32  ;;  %v2464_v39 = vld [vmem:[%s2969_s1 + $0x10] ss:$8 sm:$0x3] }
 0x1df   : > { %v707_v44 = vpop.permute.xlu1 %706  ;;  %v1319_v49 = vrot.slane %v2464_v39, %v2694_v31 }
 0x1e0   : > { %v709_v46 = vpop.permute.xlu0 %708  ;;  %561 = vmatprep.subr.mxu1 %v555_v42  ;;  %v1219_v42 = vrot.slane %v2461_v26, %v2694_v31 }
 0x1e1   : > { %v711_v47 = vsel %vm710_vm3, %v707_v44, %v709_v46  ;;  %562 = vmatpush1.msra.mxu1 %v554_v41  ;;  %v712_v53 = vsel %vm710_vm3, %v709_v46, %v707_v44  ;;  %v1323_v44 = vrot.slane %v2464_v39, %v2696_v32  ;;  %v2459_v46 = vld [vmem:[%s2974_s6 + $0x18] sm:$0xf]  ;;  %v2468_v39 = vld [vmem:[%s2979_s11 + $0x10] sm:$0xf] }
 0x1e2   : > { %v727_v48 = vmul.f32 %v723_v43, %v711_v47  ;;  %2444 = vmatmul.mubr.msk.f32.vlgmr.msra.gmra.mrb[2].mxu1 %vm557_vm4, %v556_v45  ;;  %635 = vmatprep.subr.mxu1 %v530_v24  ;;  %v726_v57 = vmul.f32 %v719_v52, %v712_v53  ;;  %v2465_v53 = vld [vmem:[%s2974_s6 + $0x20] sm:$0xf] }
 0x1e3   : > { %636 = vmatpush1.msra.mxu1 %v529_v23  ;;  %699 = vmatprep.mubr.f32.mxu1 %v2558_v5  ;;  %v807_v50 = vpop.permute.xlu1 %806  ;;  %v2453_v23 = vld [vmem:[%s2974_s6 + $0xc] sm:$0xf] }
 0x1e4   : > { %v809_v51 = vpop.permute.xlu0 %808  ;;  %733 = vmatprep.subr.mxu1 %v727_v48 }
 0x1e5   : > { %v811_v55 = vsel %vm810_vm5, %v807_v50, %v809_v51  ;;  %v812_v63 = vsel %vm810_vm5, %v809_v51, %v807_v50  ;;  %v2462_v51 = vld [vmem:[%s2974_s6 + $0x1c] sm:$0xf] }
 0x1e6   : > { %v827_v58 = vmul.f32 %v823_v54, %v811_v55  ;;  %v826_v3 = vmul.f32 %v819_v62, %v812_v63 }
 0x1e7   : > { %v907_v60 = vpop.permute.xlu1 %906 }
 0x1e8   : > { %v909_v61 = vpop.permute.xlu0 %908 }
 0x1e9   : > { %v911_v1 = vsel %vm910_vm6, %v907_v60, %v909_v61  ;;  %v912_v10 = vsel %vm910_vm6, %v909_v61, %v907_v60 }
 0x1ea   : > { %2445 = vmatmul.mubr.msk.f32.vlgmr.msra.gmra.mrb[2].mxu1 %vm557_vm4, %v2443_v56  ;;  %v927_v4 = vmul.f32 %v923_v0, %v911_v1  ;;  %v926_v14 = vmul.f32 %v919_v9, %v912_v10 }
 0x1eb   : > { %734 = vmatpush1.msra.mxu1 %v726_v57  ;;  %797 = vmatprep.mubr.f32.mxu1 %v2558_v5  ;;  %v1007_v7 = vpop.permute.xlu1 %1006 }
 0x1ec   : > { %833 = vmatprep.subr.mxu1 %v827_v58  ;;  %v1009_v8 = vpop.permute.xlu0 %1008 }
 0x1ed   : > { %v1012_v12 = vsel %vm1010_vm7, %v1009_v8, %v1007_v7  ;;  %v1011_v20 = vsel %vm1010_vm7, %v1007_v7, %v1009_v8 }
 0x1ee   : > { %v1027_v15 = vmul.f32 %v1023_v11, %v1012_v12  ;;  %v1026_v24 = vmul.f32 %v1019_v19, %v1011_v20 }
 0x1ef   : > { %v1107_v17 = vpop.permute.xlu1 %1106 }
 0x1f0   : > { %v1109_v18 = vpop.permute.xlu0 %1108 }
 0x1f1   : > { %v1112_v22 = vsel %vm1110_vm8, %v1109_v18, %v1107_v17  ;;  %v1111_v33 = vsel %vm1110_vm8, %v1107_v17, %v1109_v18  ;;  %v2471_v17 = vld [vmem:[%s2969_s1 + $0x1] ss:$8 sm:$0x3] }
 0x1f2   : > { %2448 = vmatmul.mubr.msk.f32.vlgmr.msra.gmra.mrb[2].mxu1 %vm557_vm4, %v2447_v2  ;;  %v1127_v25 = vmul.f32 %v1123_v21, %v1112_v22  ;;  %v1126_v37 = vmul.f32 %v1119_v29, %v1111_v33  ;;  %v2474_v29 = vld [vmem:[%s2969_s1 + $0x2] ss:$8 sm:$0x3] }
 0x1f3   : > { %834 = vmatpush1.msra.mxu1 %v826_v3  ;;  %897 = vmatprep.mubr.f32.mxu1 %v2558_v5  ;;  %v1207_v27 = vpop.permute.xlu1 %1206 }
 0x1f4   : > { %933 = vmatprep.subr.mxu1 %v927_v4  ;;  %v1209_v28 = vpop.permute.xlu0 %1208  ;;  %v1434_v4 = vld [vmem:[%s2977_s9] sm:$0xff] }
 0x1f5   : > { %v1212_v35 = vsel %vm1210_vm9, %v1209_v28, %v1207_v27  ;;  %v1211_v43 = vsel %vm1210_vm9, %v1207_v27, %v1209_v28 }
 0x1f6   : > { %v1227_v38 = vmul.f32 %v1223_v34, %v1212_v35  ;;  %v1226_v47 = vmul.f32 %v1219_v42, %v1211_v43  ;;  %v1699_v35 = vrot.slane %v2471_v17, %v2694_v31  ;;  %v2477_v42 = vld [vmem:[%s2969_s1 + $0x3] ss:$8 sm:$0x3] }
 0x1f7   : > { %v1307_v40 = vpop.permute.xlu1 %1306 }
 0x1f8   : > { %v1309_v41 = vpop.permute.xlu0 %1308 }
 0x1f9   : > { %v1312_v45 = vsel %vm1310_vm10, %v1309_v41, %v1307_v40  ;;  %v1311_v50 = vsel %vm1310_vm10, %v1307_v40, %v1309_v41 }
 0x1fa   : > { %2451 = vmatmul.mubr.msk.f32.vlgmr.msra.gmra.mrb[2].mxu1 %vm557_vm4, %v2450_v13  ;;  %v1327_v48 = vmul.f32 %v1323_v44, %v1312_v45  ;;  %v1326_v52 = vmul.f32 %v1319_v49, %v1311_v50  ;;  %v1525_v13 = vld [vmem:[%s2969_s1] ss:$8 sm:$0x3]  ;;  %v1797_v45 = vrot.slane %v2474_v29, %v2694_v31  ;;  %v2472_v49 = vld [vmem:[%s2979_s11 + $0x4] sm:$0xf] }
 0x1fb   : > { %934 = vmatpush1.msra.mxu1 %v926_v14  ;;  %997 = vmatprep.mubr.f32.mxu1 %v2558_v5  ;;  %v1530_v14 = vrot.slane %v1525_v13, %v2694_v31 }
 0x1fc   : > { %1033 = vmatprep.subr.mxu1 %v1027_v15  ;;  %v1534_v15 = vrot.slane %v1525_v13, %v2696_v32 }
 0x202   : > { %2454 = vmatmul.mubr.msk.f32.vlgmr.msra.gmra.mrb[2].mxu1 %vm557_vm4, %v2453_v23  ;;  %v1703_v23 = vrot.slane %v2471_v17, %v2696_v32 }
 0x203   : > { %1034 = vmatpush1.msra.mxu1 %v1026_v24  ;;  %1097 = vmatprep.mubr.f32.mxu1 %v2558_v5 }
 0x204   : > { %1133 = vmatprep.subr.mxu1 %v1127_v25  ;;  %v1539_v25 = vld [vmem:[%s2979_s11] sm:$0xf] }
 0x208   : > { %v1420_v58 = vpop.permute.xlu1 %1419 }
 0x209   : > { %v1428_v62 = vpop.permute.xlu0 %1427 }
 0x20a   : > { %2457 = vmatmul.mubr.msk.f32.vlgmr.msra.gmra.mrb[2].mxu1 %vm557_vm4, %v2456_v36 }
 0x20b   : > { %1134 = vmatpush1.msra.mxu1 %v1126_v37  ;;  %1197 = vmatprep.mubr.f32.mxu1 %v2558_v5  ;;  %v1801_v37 = vrot.slane %v2474_v29, %v2696_v32 }
 0x20c   : > { %1233 = vmatprep.subr.mxu1 %v1227_v38  ;;  %v1439_v6 = vpop.permute.xlu1 %1438 }
 0x212   : > { %2460 = vmatmul.mubr.msk.f32.vlgmr.msra.gmra.mrb[2].mxu1 %vm557_vm4, %v2459_v46 }
 0x213   : > { %1234 = vmatpush1.msra.mxu1 %v1226_v47  ;;  %1297 = vmatprep.mubr.f32.mxu1 %v2558_v5  ;;  %v1899_v47 = vrot.slane %v2477_v42, %v2696_v32 }
 0x214   : > { %1333 = vmatprep.subr.mxu1 %v1327_v48 }
 0x21a   : > { %2463 = vmatmul.mubr.msk.f32.vlgmr.msra.gmra.mrb[2].mxu1 %vm557_vm4, %v2462_v51 }
 0x21b   : > { %1334 = vmatpush1.msra.mxu1 %v1326_v52  ;;  %1397 = vmatprep.mubr.f32.mxu1 %v2558_v5  ;;  %v2480_v52 = vld [vmem:[%s2969_s1 + $0x5] ss:$8 sm:$0x3] }
 0x222   : > { %2466 = vmatmul.mubr.msk.f32.vlgmr.msra.gmra.mrb[2].mxu1 %vm557_vm4, %v2465_v53 }
 0x2f5   : > { %v1399_v54 = vpop.f32.mrb[2].mxu1 }
 0x2f6   : > { %v1408_v55 = vrot.slane %v1399_v54, 4  ;;  %v1401_v56 = vpop.f32.mrb[3].mxu1 }
 0x2f7   : > { %v1409_v57 = vrot.slane %v1401_v56, 4 }
 0x2f8   : > { %1412 = vst [vmem:[%s2652_s16] sm:$0xf0] %v1408_v55  ;;  %v1895_v55 = vrot.slane %v2477_v42, %v2694_v31 }
 0x2f9   : > { %1413 = vst [vmem:[%s2652_s16 + $0x8] sm:$0xf0] %v1409_v57  ;;  %v1997_v57 = vrot.slane %v2480_v52, %v2696_v32 }
 0x2ff   : > { %v1414_v59 = vld [vmem:[%s2652_s16] sm:$0xff] }
 0x300   : > { %v1415_v60 = vld [vmem:[%s2652_s16 + $0x8] sm:$0xff]  ;;  %v1422_v61 = vmul.f32 %v1420_v58, %v1414_v59 }
 0x301   : > { %v1423_v63 = vmul.f32 %v1420_v58, %v1415_v60  ;;  %v2475_v59 = vld [vmem:[%s2979_s11 + $0x8] sm:$0xf] }
 0x302   : > { %v1430_v0 = vadd.f32 %v1428_v62, %v1422_v61 }
 0x303   : > { %v1431_v1 = vadd.f32 %v1428_v62, %v1423_v63  ;;  %v2483_v62 = vld [vmem:[%s2969_s1 + $0x6] ss:$8 sm:$0x3] }
 0x304   : > { %v1432_v3 = vmax.f32 %v1430_v0, 0.0 }
 0x305   : > { %v1433_v2 = vmax.f32 %v1431_v1, 0.0  ;;  %v1993_v1 = vrot.slane %v2480_v52, %v2694_v31 }
 0x307   : > { %1444 = vmatprep.subr.mxu0 %v1433_v2 }
 0x308   : > { %1445 = vmatpush1.msra.mxu0 %v1432_v3  ;;  %v2095_v3 = vrot.slane %v2483_v62, %v2696_v32 }
 0x309   : > { %2467 = vmatmul.mubr.msk.f32.vlgmr.msra.gmra.mrb[0].mxu0 %vm557_vm4, %v1434_v4 }
 0x30a   : > { %1607 = vmatprep.mubr.f32.mxu0 %v2558_v5 }
 0x3dc   : > { %v1510_v7 = vpop.f32.mrb[0].mxu0 }
 0x3dd   : > { %v1511_v8 = vadd.f32 %v1510_v7, %v1439_v6  ;;  %v1512_v9 = vpop.f32.mrb[1].mxu0 }
 0x3de   : > { %v1513_v10 = vadd.f32 %v1512_v9, %v1439_v6  ;;  %v2478_v6 = vld [vmem:[%s2979_s11 + $0xc] sm:$0xf] }
 0x3df   : > { %v1515_v11 = vmax.f32 %v1511_v8, 0.0  ;;  %v2486_v9 = vld [vmem:[%s2969_s1 + $0x7] ss:$8 sm:$0x3] }
 0x3e0   : > { %v1516_v12 = vmax.f32 %v1513_v10, 0.0 }
 0x3e1   : > { %1519 = vrot.lane.b32.xlu0 %v1515_v11, %s2559_s22 }
 0x3e2   : > { %1521 = vrot.lane.b32.xlu1 %v1516_v12, %s2559_s22 }
 0x3e5   : > { %1688 = vrot.lane.b32.xlu0 %v1515_v11, %s2560_s23 }
 0x3e6   : > { %1690 = vrot.lane.b32.xlu1 %v1516_v12, %s2560_s23 }
 0x3e9   : > { %1786 = vrot.lane.b32.xlu0 %v1515_v11, %s2561_s24 }
 0x3ea   : > { %1788 = vrot.lane.b32.xlu1 %v1516_v12, %s2561_s24 }
 0x3ed   : > { %1884 = vrot.lane.b32.xlu0 %v1515_v11, %s2562_s25 }
 0x3ee   : > { %1886 = vrot.lane.b32.xlu1 %v1516_v12, %s2562_s25 }
 0x3f1   : > { %1982 = vrot.lane.b32.xlu0 %v1515_v11, %s2563_s26 }
 0x3f2   : > { %1984 = vrot.lane.b32.xlu1 %v1516_v12, %s2563_s26 }
 0x3f5   : > { %2080 = vrot.lane.b32.xlu0 %v1515_v11, %s2564_s27 }
 0x3f6   : > { %2082 = vrot.lane.b32.xlu1 %v1516_v12, %s2564_s27 }
 0x3f9   : > { %2178 = vrot.lane.b32.xlu0 %v1515_v11, %s2565_s28 }
 0x3fa   : > { %2180 = vrot.lane.b32.xlu1 %v1516_v12, %s2565_s28 }
 0x3fd   : > { %2276 = vrot.lane.b32.xlu0 %v1515_v11, %s2566_s29 }
 0x3fe   : > { %2278 = vrot.lane.b32.xlu1 %v1516_v12, %s2566_s29 }
 0x453   : > { %v1520_v16 = vpop.permute.xlu0 %1519 }
 0x454   : > { %v1522_v18 = vpop.permute.xlu1 %1521 }
 0x455   : > { %v1523_v19 = vsel %vm539_vm2, %v1520_v16, %v1522_v18  ;;  %v1524_v20 = vsel %vm539_vm2, %v1522_v18, %v1520_v16  ;;  %v2481_v16 = vld [vmem:[%s2979_s11 + $0x14] sm:$0xf] }
 0x456   : > { %v1537_v21 = vmul.f32 %v1530_v14, %v1524_v20  ;;  %v1538_v22 = vmul.f32 %v1534_v15, %v1523_v19  ;;  %v2193_v14 = vrot.slane %v2486_v9, %v2696_v32  ;;  %v2489_v19 = vld [vmem:[%s2969_s1 + $0x10] ss:$8 sm:$0x3] }
 0x457   : > { %v1689_v24 = vpop.permute.xlu0 %1688  ;;  %v2287_v29 = vrot.slane %v2489_v19, %v2694_v31 }
 0x458   : > { %v1691_v26 = vpop.permute.xlu1 %1690  ;;  %1543 = vmatprep.subr.mxu0 %v1538_v22  ;;  %v2189_v22 = vrot.slane %v2486_v9, %v2694_v31 }
 0x459   : > { %v1692_v27 = vsel %vm710_vm3, %v1689_v24, %v1691_v26  ;;  %1544 = vmatpush1.msra.mxu0 %v1537_v21  ;;  %v1693_v36 = vsel %vm710_vm3, %v1691_v26, %v1689_v24  ;;  %v2291_v24 = vrot.slane %v2489_v19, %v2696_v32  ;;  %v2484_v26 = vld [vmem:[%s2979_s11 + $0x18] sm:$0xf] }
 0x45a   : > { %v1707_v28 = vmul.f32 %v1703_v23, %v1692_v27  ;;  %2469 = vmatmul.mubr.msk.f32.vlgmr.msra.gmra.mrb[2].mxu0 %vm557_vm4, %v1539_v25  ;;  %1617 = vmatprep.subr.mxu0 %v1516_v12  ;;  %v1706_v40 = vmul.f32 %v1699_v35, %v1693_v36  ;;  %v2091_v12 = vrot.slane %v2483_v62, %v2694_v31  ;;  %v2490_v35 = vld [vmem:[%s2979_s11 + $0x20] sm:$0xf] }
 0x45b   : > { %1618 = vmatpush1.msra.mxu0 %v1515_v11  ;;  %1681 = vmatprep.mubr.f32.mxu0 %v2558_v5  ;;  %v1787_v33 = vpop.permute.xlu0 %1786 }
 0x45c   : > { %v1789_v34 = vpop.permute.xlu1 %1788  ;;  %1713 = vmatprep.subr.mxu0 %v1707_v28 }
 0x45d   : > { %v1790_v38 = vsel %vm810_vm5, %v1787_v33, %v1789_v34  ;;  %v1791_v46 = vsel %vm810_vm5, %v1789_v34, %v1787_v33  ;;  %v2487_v33 = vld [vmem:[%s2979_s11 + $0x1c] sm:$0xf] }
 0x45e   : > { %v1805_v41 = vmul.f32 %v1801_v37, %v1790_v38  ;;  %v1804_v50 = vmul.f32 %v1797_v45, %v1791_v46 }
 0x45f   : > { %v1885_v43 = vpop.permute.xlu0 %1884 }
 0x460   : > { %v1887_v44 = vpop.permute.xlu1 %1886 }
 0x461   : > { %v1888_v48 = vsel %vm910_vm6, %v1885_v43, %v1887_v44  ;;  %v1889_v56 = vsel %vm910_vm6, %v1887_v44, %v1885_v43 }
 0x462   : > { %2470 = vmatmul.mubr.msk.f32.vlgmr.msra.gmra.mrb[2].mxu0 %vm557_vm4, %v2468_v39  ;;  %v1903_v51 = vmul.f32 %v1899_v47, %v1888_v48  ;;  %v1902_v60 = vmul.f32 %v1895_v55, %v1889_v56 }
 0x463   : > { %1714 = vmatpush1.msra.mxu0 %v1706_v40  ;;  %1777 = vmatprep.mubr.f32.mxu0 %v2558_v5  ;;  %v1983_v53 = vpop.permute.xlu0 %1982 }
 0x464   : > { %1811 = vmatprep.subr.mxu0 %v1805_v41  ;;  %v1985_v54 = vpop.permute.xlu1 %1984 }
 0x465   : > { %v1987_v58 = vsel %vm1010_vm7, %v1985_v54, %v1983_v53  ;;  %v1986_v2 = vsel %vm1010_vm7, %v1983_v53, %v1985_v54 }
 0x466   : > { %v2001_v61 = vmul.f32 %v1997_v57, %v1987_v58  ;;  %v2000_v7 = vmul.f32 %v1993_v1, %v1986_v2 }
 0x467   : > { %v2081_v63 = vpop.permute.xlu0 %2080 }
 0x468   : > { %v2083_v0 = vpop.permute.xlu1 %2082 }
 0x469   : > { %v2085_v4 = vsel %vm1110_vm8, %v2083_v0, %v2081_v63  ;;  %v2084_v13 = vsel %vm1110_vm8, %v2081_v63, %v2083_v0 }
 0x46a   : > { %2473 = vmatmul.mubr.msk.f32.vlgmr.msra.gmra.mrb[2].mxu0 %vm557_vm4, %v2472_v49  ;;  %v2099_v8 = vmul.f32 %v2095_v3, %v2085_v4  ;;  %v2098_v17 = vmul.f32 %v2091_v12, %v2084_v13 }
 0x46b   : > { %1812 = vmatpush1.msra.mxu0 %v1804_v50  ;;  %1875 = vmatprep.mubr.f32.mxu0 %v2558_v5  ;;  %v2179_v10 = vpop.permute.xlu0 %2178 }
 0x46c   : > { %1909 = vmatprep.subr.mxu0 %v1903_v51  ;;  %v2181_v11 = vpop.permute.xlu1 %2180 }
 0x46d   : > { %v2183_v15 = vsel %vm1210_vm9, %v2181_v11, %v2179_v10  ;;  %v2182_v23 = vsel %vm1210_vm9, %v2179_v10, %v2181_v11 }
 0x46e   : > { %v2197_v18 = vmul.f32 %v2193_v14, %v2183_v15  ;;  %v2196_v27 = vmul.f32 %v2189_v22, %v2182_v23 }
 0x46f   : > { %v2277_v20 = vpop.permute.xlu0 %2276 }
 0x470   : > { %v2279_v21 = vpop.permute.xlu1 %2278 }
 0x471   : > { %v2281_v25 = vsel %vm1310_vm10, %v2279_v21, %v2277_v20  ;;  %v2280_v32 = vsel %vm1310_vm10, %v2277_v20, %v2279_v21 }
 0x472   : > { %2476 = vmatmul.mubr.msk.f32.vlgmr.msra.gmra.mrb[2].mxu0 %vm557_vm4, %v2475_v59  ;;  %v2295_v28 = vmul.f32 %v2291_v24, %v2281_v25  ;;  %v2294_v34 = vmul.f32 %v2287_v29, %v2280_v32 }
 0x473   : > { %1910 = vmatpush1.msra.mxu0 %v1902_v60  ;;  %1973 = vmatprep.mubr.f32.mxu0 %v2558_v5 }
 0x474   : > { %2007 = vmatprep.subr.mxu0 %v2001_v61 }
 0x47a   : > { %2479 = vmatmul.mubr.msk.f32.vlgmr.msra.gmra.mrb[2].mxu0 %vm557_vm4, %v2478_v6 }
 0x47b   : > { %2008 = vmatpush1.msra.mxu0 %v2000_v7  ;;  %2071 = vmatprep.mubr.f32.mxu0 %v2558_v5 }
 0x47c   : > { %2105 = vmatprep.subr.mxu0 %v2099_v8 }
 0x482   : > { %2482 = vmatmul.mubr.msk.f32.vlgmr.msra.gmra.mrb[2].mxu0 %vm557_vm4, %v2481_v16 }
 0x483   : > { %2106 = vmatpush1.msra.mxu0 %v2098_v17  ;;  %2169 = vmatprep.mubr.f32.mxu0 %v2558_v5 }
 0x484   : > { %2203 = vmatprep.subr.mxu0 %v2197_v18 }
 0x48a   : > { %2485 = vmatmul.mubr.msk.f32.vlgmr.msra.gmra.mrb[2].mxu0 %vm557_vm4, %v2484_v26 }
 0x48b   : > { %2204 = vmatpush1.msra.mxu0 %v2196_v27  ;;  %2267 = vmatprep.mubr.f32.mxu0 %v2558_v5 }
 0x48c   : > { %2301 = vmatprep.subr.mxu0 %v2295_v28 }
 0x492   : > { %2488 = vmatmul.mubr.msk.f32.vlgmr.msra.gmra.mrb[2].mxu0 %vm557_vm4, %v2487_v33 }
 0x493   : > { %2302 = vmatpush1.msra.mxu0 %v2294_v34  ;;  %2365 = vmatprep.mubr.f32.mxu0 %v2558_v5 }
 0x49a   : > { %2491 = vmatmul.mubr.msk.f32.vlgmr.msra.gmra.mrb[2].mxu0 %vm557_vm4, %v2490_v35 }
 0x56d   : > { %v2367_v31 = vpop.f32.mrb[2].mxu0 }
 0x56e   : > { %2374 = vst [vmem:[%s2652_s16 + $0x10] sm:$0xf] %v2367_v31  ;;  %v2369_v30 = vpop.f32.mrb[3].mxu0 }
 0x56f   : > { %2375 = vst [vmem:[%s2652_s16 + $0x18] sm:$0xf] %v2369_v30 }
 0x570 PF: > { %s22_s21 = sadd.s32 1, %s2555_s21  }
 0x571   : > { %p19_p4 = scmp.ge.s32.totalorder %s22_s21, 4  }
 0x573   :  { %21 = sbr.rel (!%p19_p4) target bundleno = 1 (0x1), region = 121 }

</bundles_post_ra>
